<compile_context>
chip_gen: v5e
topology: v5e:2x2
jax: 0.10.0
libtpu: 0.0.40
codegen_flags: <defaults>
</compile_context>

<pallas_src>
import functools

import jax
import jax.numpy as jnp
from jax.experimental import pallas as pl
from jax.experimental.pallas import tpu as pltpu


# ---------------------------------------------------------------------------
# Kernel: per-row affine  o = x * a + c   (one VPU FMA per vreg)
# ---------------------------------------------------------------------------
def actnorm_kernel(x_ref, coef_ref, o_ref):
    # x_ref: (TR, TN), coef_ref: (TR, 2)  [col 0 = scale a, col 1 = shift c]
    a = coef_ref[:, 0:1]
    c = coef_ref[:, 1:2]
    o_ref[...] = (x_ref[...] * a + c).astype(o_ref.dtype)


def _round_up(x, m):
    return ((x + m - 1) // m) * m


def _pick_tiles(R, N, itemsize, target_block_bytes=4 * 1024 * 1024, max_tn=8192):
    """Lane-dense tiles, ~4 MiB per block, lane axis widened first."""
    tn = min(_round_up(N, 128), max_tn)                    # multiple of 128
    tr = (target_block_bytes // (tn * itemsize)) // 8 * 8  # multiple of 8
    tr = max(8, min(tr, _round_up(R, 8)))
    return tr, tn


def actnorm_apply(x2, coef):
    """x2: (R, N); coef: (R, 2) f32 [a, c]  ->  (R, N) with  out = x2*a + c."""
    R, N = x2.shape
    itemsize = jnp.dtype(x2.dtype).itemsize
    tr, tn = _pick_tiles(R, N, itemsize)

    grid = (pl.cdiv(R, tr), pl.cdiv(N, tn))  # ragged edges handled by Pallas

    return pl.pallas_call(
        actnorm_kernel,
        out_shape=jax.ShapeDtypeStruct((R, N), x2.dtype),
        grid=grid,
        in_specs=[
            pl.BlockSpec((tr, tn), lambda i, j: (i, j)),
            # Tiny packed coefficient column, resident across the column axis.
            pl.BlockSpec((tr, 2), lambda i, j: (i, 0)),
        ],
        out_specs=pl.BlockSpec((tr, tn), lambda i, j: (i, j)),
        compiler_params=pltpu.CompilerParams(
            dimension_semantics=("parallel", "parallel"),
            vmem_limit_bytes=32 * 1024 * 1024,
        ),
        cost_estimate=pl.CostEstimate(
            flops=2 * R * N,
            transcendentals=0,
            bytes_accessed=2 * R * N * itemsize + R * 2 * 4,
        ),
    )(x2, coef)


# ---------------------------------------------------------------------------
# Module wrapper (forward semantics of ActNorm.forward)
# ---------------------------------------------------------------------------
def init_actnorm_params(key, num_channels):
    kb, kl = jax.random.split(key)
    size = (1, num_channels, 1, 1)
    bias = 0.05 * jax.random.normal(kb, size, dtype=jnp.float32)
    logs = 0.05 * jax.random.normal(kl, size, dtype=jnp.float32)
    return {"bias": bias, "logs": logs}


@functools.partial(jax.jit, static_argnames=("reverse",))
def actnorm_forward(params, x, logdet=0.0, reverse=False):
    B, C, H, W = x.shape
    bias = params["bias"].reshape(C).astype(jnp.float32)
    logs = params["logs"].reshape(C).astype(jnp.float32)
    dims = C * H * W  # matches the PyTorch reference: size(1)*size(2)*size(3)

    # Fold the two-step affine into a single per-channel FMA:  z = x*a + c
    if not reverse:
        s = jnp.exp(logs)            # (x + bias) * exp(logs)
        a = s
        c = bias * s
        dlogdet = jnp.sum(logs) * dims
    else:
        a = jnp.exp(-logs)           # x * exp(-logs) - bias
        c = -bias
        dlogdet = -jnp.sum(logs) * dims
    # dlogdet is a C-element reduction + scalar scale; kept in plain JAX glue.

    # Packed per-row (B*C, 2) coefficients [a, c], broadcast along H*W lanes.
    coef = jnp.tile(jnp.stack([a, c], axis=-1), (B, 1)).astype(jnp.float32)

    x2 = x.reshape(B * C, H * W)     # sublane-packed, lane-dense view
    z = actnorm_apply(x2, coef).reshape(B, C, H, W)

    return z, logdet + dlogdet


if __name__ == "__main__":
    key = jax.random.PRNGKey(0)
    k_param, k_x = jax.random.split(key)

    B, C, H, W = 2, 4, 16, 16

    params = init_actnorm_params(k_param, C)
    x = jax.random.normal(k_x, (B, C, H, W), dtype=jnp.float32)
    logdet0 = jnp.zeros((), dtype=jnp.float32)

    # Forward pass (Pallas kernel).
    z, logdet = actnorm_forward(params, x, logdet0, reverse=False)
    z = jax.block_until_ready(z)
    logdet = jax.block_until_ready(logdet)

    # Pure-JAX reference for the forward transform.
    bias4 = params["bias"]
    logs4 = params["logs"]
    z_ref = (x + bias4) * jnp.exp(logs4)
    dlogdet_ref = jnp.sum(logs4) * (C * H * W)

    assert z.shape == (B, C, H, W)
    assert jnp.max(jnp.abs(z - z_ref)) < 1e-5
    assert jnp.abs(logdet - dlogdet_ref) < 1e-4

    # Reverse pass should invert the forward transform and cancel the logdet.
    x_rec, logdet_back = actnorm_forward(params, x=z, logdet=logdet, reverse=True)
    x_rec = jax.block_until_ready(x_rec)
    assert jnp.max(jnp.abs(x_rec - x)) < 1e-5
    assert jnp.abs(logdet_back) < 1e-4

    print("KERNEL_OK")
</pallas_src>

<mosaic_0001>
module attributes {stable_mosaic.version = 11 : i64} {
  func.func @actnorm_kernel(%arg0: i32, %arg1: i32, %arg2: memref<8x256xf32, #tpu.memory_space<vmem>>, %arg3: memref<8x2xf32, #tpu.memory_space<vmem>>, %arg4: memref<8x256xf32, #tpu.memory_space<vmem>>) attributes {dimension_semantics = [#tpu.dimension_semantics<parallel>, #tpu.dimension_semantics<parallel>], iteration_bounds = array<i64: 1, 1>, scalar_prefetch = 0 : i64, scratch_operands = 0 : i64, tpu.core_type = #tpu.core_type<tc>, window_params = [{transform_indices = @transform_0, window_bounds = array<i64: 8, 256>}, {transform_indices = @transform_1, window_bounds = array<i64: 8, 2>}, {transform_indices = @transform_2, window_bounds = array<i64: 8, 256>}]} {
    %c0 = arith.constant 0 : index
    %c0_0 = arith.constant 0 : index
    %0 = vector.load %arg3[%c0, %c0_0] : memref<8x2xf32, #tpu.memory_space<vmem>>, vector<8x1xf32>
    %c0_1 = arith.constant 0 : index
    %c1 = arith.constant 1 : index
    %1 = vector.load %arg3[%c0_1, %c1] : memref<8x2xf32, #tpu.memory_space<vmem>>, vector<8x1xf32>
    %c0_2 = arith.constant 0 : index
    %c0_3 = arith.constant 0 : index
    %2 = vector.load %arg2[%c0_2, %c0_3] : memref<8x256xf32, #tpu.memory_space<vmem>>, vector<8x256xf32>
    %3 = vector.broadcast %0 : vector<8x1xf32> to vector<8x256xf32>
    %4 = arith.mulf %2, %3 : vector<8x256xf32>
    %5 = vector.broadcast %1 : vector<8x1xf32> to vector<8x256xf32>
    %6 = arith.addf %4, %5 : vector<8x256xf32>
    %c0_4 = arith.constant 0 : index
    %c0_5 = arith.constant 0 : index
    %7 = vector.load %arg4[%c0_4, %c0_5] : memref<8x256xf32, #tpu.memory_space<vmem>>, vector<8x256xf32>
    tpu.vector_store %arg4[%c0_4, %c0_5], %6 {strides = array<i32>} : memref<8x256xf32, #tpu.memory_space<vmem>>, vector<8x256xf32>,
    return
  }
  func.func @transform_0(%arg0: i32, %arg1: i32) -> (i32, i32) {
    %c0_i32 = arith.constant 0 : i32
    return %arg0, %arg1 : i32, i32
  }
  func.func @transform_1(%arg0: i32, %arg1: i32) -> (i32, i32) {
    %c0_i32 = arith.constant 0 : i32
    %c0_i32_0 = arith.constant 0 : i32
    return %arg0, %c0_i32 : i32, i32
  }
  func.func @transform_2(%arg0: i32, %arg1: i32) -> (i32, i32) {
    %c0_i32 = arith.constant 0 : i32
    return %arg0, %arg1 : i32, i32
  }
}

</mosaic_0001>

<bundles_post_ra>
// kernel: actnorm_forward.1
= control target key start
LH: loop header
LB: loop body
LE: loop exit
PB: predicated region body
PF: predicated region fallthrough
CT: control target
= control target key end

     0   :  { %v37_v0 = vmov 0   ;;  %v38_v2 = vmov 1   ;;  %s69_s1 = inlined_call_operand.vmem [shape: f32[8,2], index: 1, kind: input, shape index: {}]   ;;  %s70_s0 = inlined_call_operand.vmem [shape: f32[8,256], index: 0, kind: input, shape index: {}]   ;;  %s71_s2 = inlined_call_operand.vmem [shape: f32[8,256], index: 2, kind: output, shape index: {}]  }
   0x1   :  { %35 = vset.pattern.permute.xlu0 %v37_v0  ;;  %v11_v1 = vld [vmem:[%s69_s1] sm:$0xff]  ;;  %v13_v5 = vld [vmem:[%s70_s0 + $0x8] sm:$0xff] }
   0x2   :  { %16 = vperm.xlu0 %35, %v11_v1   ;;  %v12_v4 = vld [vmem:[%s70_s0] sm:$0xff] }
   0xa   :  { %36 = vset.pattern.permute.xlu0 %v38_v2 }
   0xb   :  { %22 = vperm.xlu0 %36, %v11_v1  }
  0x74   :  { %v17_v3 = vpop.permute.xlu0 %16 }
  0x75   :  { %v19_v6 = vmul.f32 %v17_v3, %v12_v4  ;;  %v20_v7 = vmul.f32 %v17_v3, %v13_v5 }
  0x7d   :  { %v23_v8 = vpop.permute.xlu0 %22 }
  0x7e   :  { %v25_v9 = vadd.f32 %v23_v8, %v19_v6  ;;  %v26_v10 = vadd.f32 %v23_v8, %v20_v7 }
  0x80   :  { %27 = vst [vmem:[%s71_s2] sm:$0xff] %v25_v9 }
  0x81   :  { %28 = vst [vmem:[%s71_s2 + $0x8] sm:$0xff] %v26_v10 }

</bundles_post_ra>
